<compile_context>
chip_gen: v7x
topology: tpu7x:2x2x1
jax: 0.10.0
libtpu: 0.0.40
codegen_flags: <defaults>
</compile_context>

<pallas_src>
import functools

import jax
import jax.numpy as jnp
import numpy as np
from jax import lax
from jax.experimental import pallas as pl
from jax.experimental.pallas import tpu as pltpu

TOKEN_DICT_SIZE = 120
VOCAB_PAD = 128  # embedding table padded to lane width for the one-hot matmul


def rnn_classifier_kernel(ibuf_ref, w_ref, c_ref, out_ref, *, T, B, H, O):
    TB = T * B
    H2, H3 = 2 * H, 3 * H
    V = VOCAB_PAD

    # --------------------------- prologue (off the serial chain) -------------
    tok = ibuf_ref[0:TB, :]            # (T*B, 1) int32, time-major token ids
    thr = ibuf_ref[TB:2 * TB, :]       # (T*B, 1) int32 validity thresholds

    # Fused embedding lookup + input projection + bias folds for ALL timesteps
    # and all three gates: one (T*B,128)x(128,3H) MXU call.
    ids = lax.broadcasted_iota(jnp.int32, (TB, V), 1)
    onehot = (ids == tok).astype(jnp.float32).astype(jnp.bfloat16)   # exact 0/1
    gi_all = jnp.dot(onehot, w_ref[0:V, :],
                     preferred_element_type=jnp.float32)             # (T*B, 3H) f32
    gi_rz = gi_all[:, :H2]             # [r|z] halves, pre-scaled by 0.5 (see prepare)
    gi_n = gi_all[:, H2:]              # n gate, unscaled (one-time lane extract)

    # All T packed-sequence validity masks from ONE compare (no per-step
    # compare + broadcast in the unrolled loop): row r=t*B+b valid iff r<thr[b].
    row = lax.broadcasted_iota(jnp.int32, (TB, H), 0)
    valid = row < thr                  # (T*B, H) bool

    # Recurrent weights / constants, loaded once and resident for the loop.
    whh_all = w_ref[V:V + H, :]        # (H, 3H) bf16 = [0.5*Whr^T | 0.5*Whz^T | 0.5*Whn^T]
    whh_rz = whh_all[:, :H2]           # (H, 2H) bf16
    whh_n = whh_all[:, H2:]            # (H, H)  bf16
    cvals = c_ref[...]                 # (2, H) f32
    bhh_nh = cvals[0:1, :]             # (1, H) = 0.5*b_hn
    fcw = w_ref[V + H:V + 2 * H, :][:, :O]   # (H, O) bf16, duplicated-concat folded
    fcb = cvals[1:2, :O]               # (1, O) f32

    # ---------------- reverse-direction GRU recurrence (serial chain) --------
    # hidden[-1] of the PyTorch module is the reverse direction of the single
    # layer; the forward direction never reaches the output, so it is skipped.
    h = jnp.zeros((B, H), jnp.float32)
    for t in range(T - 1, -1, -1):                       # T small -> fully unrolled
        lo = t * B                                       # multiple of 8 -> aligned slices
        hb = h.astype(jnp.bfloat16)                      # matmul operand (== MXU truncation)
        gh_rz = jnp.dot(hb, whh_rz, preferred_element_type=jnp.float32)   # 0.5*h@[Whr|Whz]^T
        gh_nh = (jnp.dot(hb, whh_n, preferred_element_type=jnp.float32)
                 + bhh_nh)                               # 0.5*(h@Whn^T + b_hn), hides under tanh
        # sigmoid for r AND z in one EUP push: sigma(a) = 0.5*tanh(a/2)+0.5,
        # with the /2 pre-folded into gi_rz / whh_rz.
        trz = jnp.tanh(gi_rz[lo:lo + B, :] + gh_rz)      # (B, 2H)
        # n = tanh(gi_n + r*(h@Whn^T + b_hn)),  r = 0.5*trz_r+0.5  ->  (trz_r+1)*gh_nh
        n = jnp.tanh(gi_n[lo:lo + B, :] + (trz[:, :H] + 1.0) * gh_nh)
        z = trz[:, H:] * 0.5 + 0.5                       # lane extract + scale: off the n-tanh path
        h_cand = (1.0 - z) * n + z * h
        h = jnp.where(valid[lo:lo + B, :], h_cand, h)    # packed-seq validity mask

    # fc(cat([h, h])) with the duplicated concat pre-folded into fcw.
    out_ref[...] = (jnp.dot(h.astype(jnp.bfloat16), fcw,
                            preferred_element_type=jnp.float32) + fcb)


def init_params(key, hidden_size, output_size):
    """Deterministic parameter init matching the PyTorch module's shapes/init."""
    H, O = hidden_size, output_size
    ks = jax.random.split(key, 11)
    bound = 1.0 / np.sqrt(H)

    def u(kk, shape, b):
        return jax.random.uniform(kk, shape, jnp.float32, -b, b)

    emb = jax.random.normal(ks[0], (TOKEN_DICT_SIZE, H), jnp.float32)  # Embedding ~ N(0,1)
    # GRU params, PyTorch layout (3H, H) / (3H,), stacked over directions [fwd, bwd]
    wih = jnp.stack([u(ks[1], (3 * H, H), bound), u(ks[2], (3 * H, H), bound)])
    whh = jnp.stack([u(ks[3], (3 * H, H), bound), u(ks[4], (3 * H, H), bound)])
    bih = jnp.stack([u(ks[5], (3 * H,), bound), u(ks[6], (3 * H,), bound)])
    bhh = jnp.stack([u(ks[7], (3 * H,), bound), u(ks[8], (3 * H,), bound)])
    fb = 1.0 / np.sqrt(2 * H)
    fcw = u(ks[9], (O, 2 * H), fb)                                     # Linear weight
    fcb = u(ks[10], (O,), fb)                                          # Linear bias
    return dict(emb=emb, wih=wih, whh=whh, bih=bih, bhh=bhh, fcw=fcw, fcb=fcb)


def prepare_kernel_params(params, hidden_size, output_size):
    """One-time weight-side transforms (done once, NOT per forward call)."""
    H, O = hidden_size, output_size
    assert O <= H, "output_size must fit inside the packed constant rows"
    emb_pad = jnp.zeros((VOCAB_PAD, H), jnp.float32).at[:TOKEN_DICT_SIZE].set(params["emb"])

    # Only the reverse direction (d=1) contributes to the module output.
    wih_b, whh_b = params["wih"][1], params["whh"][1]          # (3H, H)
    bih_b, bhh_b = params["bih"][1], params["bhh"][1]          # (3H,)

    def w_gate(w, g):                                          # (H, H), transposed block
        return w[g * H:(g + 1) * H].T

    def b_gate(b, g):                                          # (H,)
        return b[g * H:(g + 1) * H]

    # Hoisted per-gate gi table (128, 3H) = [r | z | n]:
    #   r/z columns: 0.5*(emb@W_i*^T + b_i* + b_h*)   (0.5 pre-folds sigmoid's a/2; exact)
    #   n  columns:       emb@W_in^T + b_in           (b_hn stays with the recurrent term)
    gi_r = 0.5 * (emb_pad @ w_gate(wih_b, 0) + (b_gate(bih_b, 0) + b_gate(bhh_b, 0))[None, :])
    gi_z = 0.5 * (emb_pad @ w_gate(wih_b, 1) + (b_gate(bih_b, 1) + b_gate(bhh_b, 1))[None, :])
    gi_n = emb_pad @ w_gate(wih_b, 2) + b_gate(bih_b, 2)[None, :]
    emb_wih = jnp.concatenate([gi_r, gi_z, gi_n], axis=1)                    # (128, 3H)

    # Recurrent weights (H, 3H) = [0.5*Whr^T | 0.5*Whz^T | 0.5*Whn^T] (0.5 exact).
    whh_all = jnp.concatenate(
        [0.5 * w_gate(whh_b, 0), 0.5 * w_gate(whh_b, 1), 0.5 * w_gate(whh_b, 2)], axis=1)

    # hidden_cat = [h, h] -> fold the duplicated concat into the FC weight; pad to 3H lanes.
    fcw_fold = (params["fcw"][:, :H] + params["fcw"][:, H:]).T               # (H, O)
    fcw_pad = jnp.zeros((H, 3 * H), jnp.float32).at[:, :O].set(fcw_fold)

    # One bf16 weight slab (3 row blocks) -> single DMA of all matmul operands.
    wbuf = jnp.concatenate([emb_wih, whh_all, fcw_pad], axis=0).astype(jnp.bfloat16)

    # Tiny f32 constants kept out of bf16: row 0 = 0.5*b_hn, row 1 = fc bias (padded).
    bhh_nh = (0.5 * b_gate(bhh_b, 2)).reshape(1, H)
    fcb_pad = jnp.zeros((1, H), jnp.float32).at[0, :O].set(params["fcb"])
    cbuf = jnp.concatenate([bhh_nh, fcb_pad], axis=0)                        # (2, H) f32
    return dict(wbuf=wbuf, cbuf=cbuf)


def rnn_classifier_forward(prep, tokens, seq_len, hidden_size, output_size,
                           max_len=None):
    """tokens: (B, S) int32 ids; seq_len: (B,) int32 sorted descending.

    `max_len` (static Python int) optionally trims the recurrence to
    max(seq_len) steps; masked tail steps beyond it are provably dead.
    """
    B, S = tokens.shape
    H, O = hidden_size, output_size
    T = S
    if max_len is not None:
        T = max(1, min(S, int(max_len)))
        smax = None
        try:
            smax = int(np.asarray(seq_len).max())     # only checkable when concrete
        except Exception:
            smax = None
        if smax is not None and smax > T:
            raise ValueError("max_len < max(seq_len): trimmed steps would not be dead")
    B_pad = max(8, ((B + 7) // 8) * 8)   # full sublane tile -> aligned per-step slices

    # --- glue (no compute): one int32 buffer = [time-major tokens ; validity thresholds].
    # Padded batch rows get seq_len = 0 so their hidden state stays 0.
    tok = jnp.zeros((T, B_pad), jnp.int32).at[:, :B].set(tokens[:, :T].T.astype(jnp.int32))
    sl = jnp.zeros((B_pad,), jnp.int32).at[:B].set(seq_len.astype(jnp.int32))
    # row r = t*B_pad + b is valid  <=>  t < seq_len[b]  <=>  r < seq_len[b]*B_pad + b
    thr = sl * B_pad + jnp.arange(B_pad, dtype=jnp.int32)
    ibuf = jnp.concatenate([tok.reshape(T * B_pad, 1),
                            jnp.tile(thr, (T,)).reshape(T * B_pad, 1)], axis=0)

    kernel = functools.partial(rnn_classifier_kernel, T=T, B=B_pad, H=H, O=O)
    vmem = pl.BlockSpec(memory_space=pltpu.MemorySpace.VMEM)
    out = pl.pallas_call(
        kernel,
        out_shape=jax.ShapeDtypeStruct((B_pad, O), jnp.float32),
        in_specs=[vmem, vmem, vmem],
        out_specs=vmem,
    )(ibuf, prep["wbuf"], prep["cbuf"])
    return out[:B]


def reference_forward(params, tokens, seq_len, H, O):
    """Pure-JAX replica of the PyTorch forward() for a correctness check."""
    B, S = tokens.shape
    emb = params["emb"][tokens]                                  # (B, S, H)
    emb = jnp.transpose(emb, (1, 0, 2))                          # (S, B, H)

    def direction(d, reverse):
        wih, whh = params["wih"][d], params["whh"][d]
        bih, bhh = params["bih"][d], params["bhh"][d]
        h = jnp.zeros((B, H), jnp.float32)
        order = range(S - 1, -1, -1) if reverse else range(S)
        for t in order:
            x = emb[t]
            gi = x @ wih.T + bih
            gh = h @ whh.T + bhh
            r = jax.nn.sigmoid(gi[:, :H] + gh[:, :H])
            z = jax.nn.sigmoid(gi[:, H:2 * H] + gh[:, H:2 * H])
            n = jnp.tanh(gi[:, 2 * H:] + r * gh[:, 2 * H:])
            hc = (1.0 - z) * n + z * h
            h = jnp.where((t < seq_len)[:, None], hc, h)
        return h

    h_bwd = direction(1, True)                                   # hidden[-1]
    hidden_cat = jnp.concatenate([h_bwd, h_bwd], axis=1)
    return hidden_cat @ params["fcw"].T + params["fcb"]


if __name__ == "__main__":
    B, S, H, O = 2, 8, 32, 8                 # batch, max seq, hidden_size, output_size
    key = jax.random.PRNGKey(0)
    kp, kt = jax.random.split(key)
    params = init_params(kp, H, O)
    prep = prepare_kernel_params(params, H, O)   # weight-side transforms done ONCE

    seq_len = jnp.array([7, 5], jnp.int32)   # sorted descending (pack_padded_sequence)
    tokens = jax.random.randint(kt, (B, S), 1, TOKEN_DICT_SIZE, jnp.int32)
    pos = jnp.arange(S)[None, :]
    tokens = jnp.where(pos < seq_len[:, None], tokens, 0)        # zero the padding slots

    out = jax.block_until_ready(
        rnn_classifier_forward(prep, tokens, seq_len, H, O,
                               max_len=int(seq_len.max())))      # trim dead tail steps
    ref = jax.block_until_ready(reference_forward(params, tokens, seq_len, H, O))

    assert out.shape == (B, O)
    np.testing.assert_allclose(np.asarray(out), np.asarray(ref), rtol=2e-3, atol=2e-3)
    print("KERNEL_OK")
</pallas_src>

<mosaic_0001>
module attributes {stable_mosaic.version = 11 : i64} {
  func.func @rnn_classifier_kernel(%arg0: memref<112x1xi32, #tpu.memory_space<vmem>>, %arg1: memref<192x96xbf16, #tpu.memory_space<vmem>>, %arg2: memref<2x32xf32, #tpu.memory_space<vmem>>, %arg3: memref<8x8xf32, #tpu.memory_space<vmem>>) attributes {dimension_semantics = [], scalar_prefetch = 0 : i64, scratch_operands = 0 : i64, tpu.core_type = #tpu.core_type<tc>} {
    %c0 = arith.constant 0 : index
    %c0_0 = arith.constant 0 : index
    %0 = vector.load %arg0[%c0, %c0_0] : memref<112x1xi32, #tpu.memory_space<vmem>>, vector<56x1xi32>
    %c56 = arith.constant 56 : index
    %c0_1 = arith.constant 0 : index
    %1 = vector.load %arg0[%c56, %c0_1] : memref<112x1xi32, #tpu.memory_space<vmem>>, vector<56x1xi32>
    %2 = tpu.iota {dimensions = array<i32: 1>} : vector<56x128xi32>
    %3 = vector.broadcast %0 : vector<56x1xi32> to vector<56x128xi32>
    %4 = arith.cmpi eq, %2, %3 : vector<56x128xi32>
    %5 = arith.extui %4 : vector<56x128xi1> to vector<56x128xi32>
    %6 = arith.sitofp %5 : vector<56x128xi32> to vector<56x128xf32>
    %7 = arith.truncf %6 : vector<56x128xf32> to vector<56x128xbf16>
    %c0_2 = arith.constant 0 : index
    %c0_3 = arith.constant 0 : index
    %8 = vector.load %arg1[%c0_2, %c0_3] : memref<192x96xbf16, #tpu.memory_space<vmem>>, vector<128x96xbf16>
    %cst = arith.constant dense<0.000000e+00> : vector<56x96xf32>
    %9 = tpu.matmul %7, %8, %cst {dimension_numbers = #tpu.dot_dimension_numbers<[1], [0], [0], [1], [0, 0, 1, 1], [], []>} : vector<56x128xbf16>, vector<128x96xbf16>, vector<56x96xf32> -> vector<56x96xf32>
    %10 = vector.extract_strided_slice %9 {offsets = [0, 0], sizes = [56, 64], strides = [1, 1]} : vector<56x96xf32> to vector<56x64xf32>
    %11 = vector.extract_strided_slice %9 {offsets = [0, 64], sizes = [56, 32], strides = [1, 1]} : vector<56x96xf32> to vector<56x32xf32>
    %12 = tpu.iota {dimensions = array<i32: 0>} : vector<56x32xi32>
    %13 = vector.broadcast %1 : vector<56x1xi32> to vector<56x32xi32>
    %14 = arith.cmpi slt, %12, %13 : vector<56x32xi32>
    %c128 = arith.constant 128 : index
    %c0_4 = arith.constant 0 : index
    %15 = vector.load %arg1[%c128, %c0_4] : memref<192x96xbf16, #tpu.memory_space<vmem>>, vector<32x96xbf16>
    %16 = vector.extract_strided_slice %15 {offsets = [0, 0], sizes = [32, 64], strides = [1, 1]} : vector<32x96xbf16> to vector<32x64xbf16>
    %17 = vector.extract_strided_slice %15 {offsets = [0, 64], sizes = [32, 32], strides = [1, 1]} : vector<32x96xbf16> to vector<32x32xbf16>
    %c0_5 = arith.constant 0 : index
    %c0_6 = arith.constant 0 : index
    %18 = vector.load %arg2[%c0_5, %c0_6] : memref<2x32xf32, #tpu.memory_space<vmem>>, vector<2x32xf32>
    %19 = vector.extract_strided_slice %18 {offsets = [0, 0], sizes = [1, 32], strides = [1, 1]} : vector<2x32xf32> to vector<1x32xf32>
    %c160 = arith.constant 160 : index
    %c0_7 = arith.constant 0 : index
    %20 = vector.load %arg1[%c160, %c0_7] : memref<192x96xbf16, #tpu.memory_space<vmem>>, vector<32x96xbf16>
    %21 = vector.extract_strided_slice %20 {offsets = [0, 0], sizes = [32, 8], strides = [1, 1]} : vector<32x96xbf16> to vector<32x8xbf16>
    %22 = vector.extract_strided_slice %18 {offsets = [1, 0], sizes = [1, 8], strides = [1, 1]} : vector<2x32xf32> to vector<1x8xf32>
    %cst_8 = arith.constant 0.000000e+00 : f32
    %23 = vector.broadcast %cst_8 : f32 to vector<8x32xf32>
    %24 = arith.truncf %23 : vector<8x32xf32> to vector<8x32xbf16>
    %cst_9 = arith.constant dense<0.000000e+00> : vector<8x64xf32>
    %25 = tpu.matmul %24, %16, %cst_9 {dimension_numbers = #tpu.dot_dimension_numbers<[1], [0], [0], [1], [0, 0, 1, 1], [], []>} : vector<8x32xbf16>, vector<32x64xbf16>, vector<8x64xf32> -> vector<8x64xf32>
    %cst_10 = arith.constant dense<0.000000e+00> : vector<8x32xf32>
    %26 = tpu.matmul %24, %17, %cst_10 {dimension_numbers = #tpu.dot_dimension_numbers<[1], [0], [0], [1], [0, 0, 1, 1], [], []>} : vector<8x32xbf16>, vector<32x32xbf16>, vector<8x32xf32> -> vector<8x32xf32>
    %27 = vector.broadcast %19 : vector<1x32xf32> to vector<8x32xf32>
    %28 = arith.addf %26, %27 : vector<8x32xf32>
    %29 = vector.extract_strided_slice %10 {offsets = [48, 0], sizes = [8, 64], strides = [1, 1]} : vector<56x64xf32> to vector<8x64xf32>
    %30 = arith.addf %29, %25 : vector<8x64xf32>
    %31 = math.tanh %30 : vector<8x64xf32>
    %32 = vector.extract_strided_slice %11 {offsets = [48, 0], sizes = [8, 32], strides = [1, 1]} : vector<56x32xf32> to vector<8x32xf32>
    %33 = vector.extract_strided_slice %31 {offsets = [0, 0], sizes = [8, 32], strides = [1, 1]} : vector<8x64xf32> to vector<8x32xf32>
    %cst_11 = arith.constant 1.000000e+00 : f32
    %34 = vector.broadcast %cst_11 : f32 to vector<8x32xf32>
    %35 = arith.addf %33, %34 : vector<8x32xf32>
    %36 = arith.mulf %35, %28 : vector<8x32xf32>
    %37 = arith.addf %32, %36 : vector<8x32xf32>
    %38 = math.tanh %37 : vector<8x32xf32>
    %39 = vector.extract_strided_slice %31 {offsets = [0, 32], sizes = [8, 32], strides = [1, 1]} : vector<8x64xf32> to vector<8x32xf32>
    %cst_12 = arith.constant 5.000000e-01 : f32
    %40 = vector.broadcast %cst_12 : f32 to vector<8x32xf32>
    %41 = arith.mulf %39, %40 : vector<8x32xf32>
    %cst_13 = arith.constant 5.000000e-01 : f32
    %42 = vector.broadcast %cst_13 : f32 to vector<8x32xf32>
    %43 = arith.addf %41, %42 : vector<8x32xf32>
    %cst_14 = arith.constant 1.000000e+00 : f32
    %44 = vector.broadcast %cst_14 : f32 to vector<8x32xf32>
    %45 = arith.subf %44, %43 : vector<8x32xf32>
    %46 = arith.mulf %45, %38 : vector<8x32xf32>
    %47 = arith.mulf %43, %23 : vector<8x32xf32>
    %48 = arith.addf %46, %47 : vector<8x32xf32>
    %49 = vector.extract_strided_slice %14 {offsets = [48, 0], sizes = [8, 32], strides = [1, 1]} : vector<56x32xi1> to vector<8x32xi1>
    %50 = arith.select %49, %48, %23 : vector<8x32xi1>, vector<8x32xf32>
    %51 = arith.truncf %50 : vector<8x32xf32> to vector<8x32xbf16>
    %cst_15 = arith.constant dense<0.000000e+00> : vector<8x64xf32>
    %52 = tpu.matmul %51, %16, %cst_15 {dimension_numbers = #tpu.dot_dimension_numbers<[1], [0], [0], [1], [0, 0, 1, 1], [], []>} : vector<8x32xbf16>, vector<32x64xbf16>, vector<8x64xf32> -> vector<8x64xf32>
    %cst_16 = arith.constant dense<0.000000e+00> : vector<8x32xf32>
    %53 = tpu.matmul %51, %17, %cst_16 {dimension_numbers = #tpu.dot_dimension_numbers<[1], [0], [0], [1], [0, 0, 1, 1], [], []>} : vector<8x32xbf16>, vector<32x32xbf16>, vector<8x32xf32> -> vector<8x32xf32>
    %54 = vector.broadcast %19 : vector<1x32xf32> to vector<8x32xf32>
    %55 = arith.addf %53, %54 : vector<8x32xf32>
    %56 = vector.extract_strided_slice %10 {offsets = [40, 0], sizes = [8, 64], strides = [1, 1]} : vector<56x64xf32> to vector<8x64xf32>
    %57 = arith.addf %56, %52 : vector<8x64xf32>
    %58 = math.tanh %57 : vector<8x64xf32>
    %59 = vector.extract_strided_slice %11 {offsets = [40, 0], sizes = [8, 32], strides = [1, 1]} : vector<56x32xf32> to vector<8x32xf32>
    %60 = vector.extract_strided_slice %58 {offsets = [0, 0], sizes = [8, 32], strides = [1, 1]} : vector<8x64xf32> to vector<8x32xf32>
    %cst_17 = arith.constant 1.000000e+00 : f32
    %61 = vector.broadcast %cst_17 : f32 to vector<8x32xf32>
    %62 = arith.addf %60, %61 : vector<8x32xf32>
    %63 = arith.mulf %62, %55 : vector<8x32xf32>
    %64 = arith.addf %59, %63 : vector<8x32xf32>
    %65 = math.tanh %64 : vector<8x32xf32>
    %66 = vector.extract_strided_slice %58 {offsets = [0, 32], sizes = [8, 32], strides = [1, 1]} : vector<8x64xf32> to vector<8x32xf32>
    %cst_18 = arith.constant 5.000000e-01 : f32
    %67 = vector.broadcast %cst_18 : f32 to vector<8x32xf32>
    %68 = arith.mulf %66, %67 : vector<8x32xf32>
    %cst_19 = arith.constant 5.000000e-01 : f32
    %69 = vector.broadcast %cst_19 : f32 to vector<8x32xf32>
    %70 = arith.addf %68, %69 : vector<8x32xf32>
    %cst_20 = arith.constant 1.000000e+00 : f32
    %71 = vector.broadcast %cst_20 : f32 to vector<8x32xf32>
    %72 = arith.subf %71, %70 : vector<8x32xf32>
    %73 = arith.mulf %72, %65 : vector<8x32xf32>
    %74 = arith.mulf %70, %50 : vector<8x32xf32>
    %75 = arith.addf %73, %74 : vector<8x32xf32>
    %76 = vector.extract_strided_slice %14 {offsets = [40, 0], sizes = [8, 32], strides = [1, 1]} : vector<56x32xi1> to vector<8x32xi1>
    %77 = arith.select %76, %75, %50 : vector<8x32xi1>, vector<8x32xf32>
    %78 = arith.truncf %77 : vector<8x32xf32> to vector<8x32xbf16>
    %cst_21 = arith.constant dense<0.000000e+00> : vector<8x64xf32>
    %79 = tpu.matmul %78, %16, %cst_21 {dimension_numbers = #tpu.dot_dimension_numbers<[1], [0], [0], [1], [0, 0, 1, 1], [], []>} : vector<8x32xbf16>, vector<32x64xbf16>, vector<8x64xf32> -> vector<8x64xf32>
    %cst_22 = arith.constant dense<0.000000e+00> : vector<8x32xf32>
    %80 = tpu.matmul %78, %17, %cst_22 {dimension_numbers = #tpu.dot_dimension_numbers<[1], [0], [0], [1], [0, 0, 1, 1], [], []>} : vector<8x32xbf16>, vector<32x32xbf16>, vector<8x32xf32> -> vector<8x32xf32>
    %81 = vector.broadcast %19 : vector<1x32xf32> to vector<8x32xf32>
    %82 = arith.addf %80, %81 : vector<8x32xf32>
    %83 = vector.extract_strided_slice %10 {offsets = [32, 0], sizes = [8, 64], strides = [1, 1]} : vector<56x64xf32> to vector<8x64xf32>
    %84 = arith.addf %83, %79 : vector<8x64xf32>
    %85 = math.tanh %84 : vector<8x64xf32>
    %86 = vector.extract_strided_slice %11 {offsets = [32, 0], sizes = [8, 32], strides = [1, 1]} : vector<56x32xf32> to vector<8x32xf32>
    %87 = vector.extract_strided_slice %85 {offsets = [0, 0], sizes = [8, 32], strides = [1, 1]} : vector<8x64xf32> to vector<8x32xf32>
    %cst_23 = arith.constant 1.000000e+00 : f32
    %88 = vector.broadcast %cst_23 : f32 to vector<8x32xf32>
    %89 = arith.addf %87, %88 : vector<8x32xf32>
    %90 = arith.mulf %89, %82 : vector<8x32xf32>
    %91 = arith.addf %86, %90 : vector<8x32xf32>
    %92 = math.tanh %91 : vector<8x32xf32>
    %93 = vector.extract_strided_slice %85 {offsets = [0, 32], sizes = [8, 32], strides = [1, 1]} : vector<8x64xf32> to vector<8x32xf32>
    %cst_24 = arith.constant 5.000000e-01 : f32
    %94 = vector.broadcast %cst_24 : f32 to vector<8x32xf32>
    %95 = arith.mulf %93, %94 : vector<8x32xf32>
    %cst_25 = arith.constant 5.000000e-01 : f32
    %96 = vector.broadcast %cst_25 : f32 to vector<8x32xf32>
    %97 = arith.addf %95, %96 : vector<8x32xf32>
    %cst_26 = arith.constant 1.000000e+00 : f32
    %98 = vector.broadcast %cst_26 : f32 to vector<8x32xf32>
    %99 = arith.subf %98, %97 : vector<8x32xf32>
    %100 = arith.mulf %99, %92 : vector<8x32xf32>
    %101 = arith.mulf %97, %77 : vector<8x32xf32>
    %102 = arith.addf %100, %101 : vector<8x32xf32>
    %103 = vector.extract_strided_slice %14 {offsets = [32, 0], sizes = [8, 32], strides = [1, 1]} : vector<56x32xi1> to vector<8x32xi1>
    %104 = arith.select %103, %102, %77 : vector<8x32xi1>, vector<8x32xf32>
    %105 = arith.truncf %104 : vector<8x32xf32> to vector<8x32xbf16>
    %cst_27 = arith.constant dense<0.000000e+00> : vector<8x64xf32>
    %106 = tpu.matmul %105, %16, %cst_27 {dimension_numbers = #tpu.dot_dimension_numbers<[1], [0], [0], [1], [0, 0, 1, 1], [], []>} : vector<8x32xbf16>, vector<32x64xbf16>, vector<8x64xf32> -> vector<8x64xf32>
    %cst_28 = arith.constant dense<0.000000e+00> : vector<8x32xf32>
    %107 = tpu.matmul %105, %17, %cst_28 {dimension_numbers = #tpu.dot_dimension_numbers<[1], [0], [0], [1], [0, 0, 1, 1], [], []>} : vector<8x32xbf16>, vector<32x32xbf16>, vector<8x32xf32> -> vector<8x32xf32>
    %108 = vector.broadcast %19 : vector<1x32xf32> to vector<8x32xf32>
    %109 = arith.addf %107, %108 : vector<8x32xf32>
    %110 = vector.extract_strided_slice %10 {offsets = [24, 0], sizes = [8, 64], strides = [1, 1]} : vector<56x64xf32> to vector<8x64xf32>
    %111 = arith.addf %110, %106 : vector<8x64xf32>
    %112 = math.tanh %111 : vector<8x64xf32>
    %113 = vector.extract_strided_slice %11 {offsets = [24, 0], sizes = [8, 32], strides = [1, 1]} : vector<56x32xf32> to vector<8x32xf32>
    %114 = vector.extract_strided_slice %112 {offsets = [0, 0], sizes = [8, 32], strides = [1, 1]} : vector<8x64xf32> to vector<8x32xf32>
    %cst_29 = arith.constant 1.000000e+00 : f32
    %115 = vector.broadcast %cst_29 : f32 to vector<8x32xf32>
    %116 = arith.addf %114, %115 : vector<8x32xf32>
    %117 = arith.mulf %116, %109 : vector<8x32xf32>
    %118 = arith.addf %113, %117 : vector<8x32xf32>
    %119 = math.tanh %118 : vector<8x32xf32>
    %120 = vector.extract_strided_slice %112 {offsets = [0, 32], sizes = [8, 32], strides = [1, 1]} : vector<8x64xf32> to vector<8x32xf32>
    %cst_30 = arith.constant 5.000000e-01 : f32
    %121 = vector.broadcast %cst_30 : f32 to vector<8x32xf32>
    %122 = arith.mulf %120, %121 : vector<8x32xf32>
    %cst_31 = arith.constant 5.000000e-01 : f32
    %123 = vector.broadcast %cst_31 : f32 to vector<8x32xf32>
    %124 = arith.addf %122, %123 : vector<8x32xf32>
    %cst_32 = arith.constant 1.000000e+00 : f32
    %125 = vector.broadcast %cst_32 : f32 to vector<8x32xf32>
    %126 = arith.subf %125, %124 : vector<8x32xf32>
    %127 = arith.mulf %126, %119 : vector<8x32xf32>
    %128 = arith.mulf %124, %104 : vector<8x32xf32>
    %129 = arith.addf %127, %128 : vector<8x32xf32>
    %130 = vector.extract_strided_slice %14 {offsets = [24, 0], sizes = [8, 32], strides = [1, 1]} : vector<56x32xi1> to vector<8x32xi1>
    %131 = arith.select %130, %129, %104 : vector<8x32xi1>, vector<8x32xf32>
    %132 = arith.truncf %131 : vector<8x32xf32> to vector<8x32xbf16>
    %cst_33 = arith.constant dense<0.000000e+00> : vector<8x64xf32>
    %133 = tpu.matmul %132, %16, %cst_33 {dimension_numbers = #tpu.dot_dimension_numbers<[1], [0], [0], [1], [0, 0, 1, 1], [], []>} : vector<8x32xbf16>, vector<32x64xbf16>, vector<8x64xf32> -> vector<8x64xf32>
    %cst_34 = arith.constant dense<0.000000e+00> : vector<8x32xf32>
    %134 = tpu.matmul %132, %17, %cst_34 {dimension_numbers = #tpu.dot_dimension_numbers<[1], [0], [0], [1], [0, 0, 1, 1], [], []>} : vector<8x32xbf16>, vector<32x32xbf16>, vector<8x32xf32> -> vector<8x32xf32>
    %135 = vector.broadcast %19 : vector<1x32xf32> to vector<8x32xf32>
    %136 = arith.addf %134, %135 : vector<8x32xf32>
    %137 = vector.extract_strided_slice %10 {offsets = [16, 0], sizes = [8, 64], strides = [1, 1]} : vector<56x64xf32> to vector<8x64xf32>
    %138 = arith.addf %137, %133 : vector<8x64xf32>
    %139 = math.tanh %138 : vector<8x64xf32>
    %140 = vector.extract_strided_slice %11 {offsets = [16, 0], sizes = [8, 32], strides = [1, 1]} : vector<56x32xf32> to vector<8x32xf32>
    %141 = vector.extract_strided_slice %139 {offsets = [0, 0], sizes = [8, 32], strides = [1, 1]} : vector<8x64xf32> to vector<8x32xf32>
    %cst_35 = arith.constant 1.000000e+00 : f32
    %142 = vector.broadcast %cst_35 : f32 to vector<8x32xf32>
    %143 = arith.addf %141, %142 : vector<8x32xf32>
    %144 = arith.mulf %143, %136 : vector<8x32xf32>
    %145 = arith.addf %140, %144 : vector<8x32xf32>
    %146 = math.tanh %145 : vector<8x32xf32>
    %147 = vector.extract_strided_slice %139 {offsets = [0, 32], sizes = [8, 32], strides = [1, 1]} : vector<8x64xf32> to vector<8x32xf32>
    %cst_36 = arith.constant 5.000000e-01 : f32
    %148 = vector.broadcast %cst_36 : f32 to vector<8x32xf32>
    %149 = arith.mulf %147, %148 : vector<8x32xf32>
    %cst_37 = arith.constant 5.000000e-01 : f32
    %150 = vector.broadcast %cst_37 : f32 to vector<8x32xf32>
    %151 = arith.addf %149, %150 : vector<8x32xf32>
    %cst_38 = arith.constant 1.000000e+00 : f32
    %152 = vector.broadcast %cst_38 : f32 to vector<8x32xf32>
    %153 = arith.subf %152, %151 : vector<8x32xf32>
    %154 = arith.mulf %153, %146 : vector<8x32xf32>
    %155 = arith.mulf %151, %131 : vector<8x32xf32>
    %156 = arith.addf %154, %155 : vector<8x32xf32>
    %157 = vector.extract_strided_slice %14 {offsets = [16, 0], sizes = [8, 32], strides = [1, 1]} : vector<56x32xi1> to vector<8x32xi1>
    %158 = arith.select %157, %156, %131 : vector<8x32xi1>, vector<8x32xf32>
    %159 = arith.truncf %158 : vector<8x32xf32> to vector<8x32xbf16>
    %cst_39 = arith.constant dense<0.000000e+00> : vector<8x64xf32>
    %160 = tpu.matmul %159, %16, %cst_39 {dimension_numbers = #tpu.dot_dimension_numbers<[1], [0], [0], [1], [0, 0, 1, 1], [], []>} : vector<8x32xbf16>, vector<32x64xbf16>, vector<8x64xf32> -> vector<8x64xf32>
    %cst_40 = arith.constant dense<0.000000e+00> : vector<8x32xf32>
    %161 = tpu.matmul %159, %17, %cst_40 {dimension_numbers = #tpu.dot_dimension_numbers<[1], [0], [0], [1], [0, 0, 1, 1], [], []>} : vector<8x32xbf16>, vector<32x32xbf16>, vector<8x32xf32> -> vector<8x32xf32>
    %162 = vector.broadcast %19 : vector<1x32xf32> to vector<8x32xf32>
    %163 = arith.addf %161, %162 : vector<8x32xf32>
    %164 = vector.extract_strided_slice %10 {offsets = [8, 0], sizes = [8, 64], strides = [1, 1]} : vector<56x64xf32> to vector<8x64xf32>
    %165 = arith.addf %164, %160 : vector<8x64xf32>
    %166 = math.tanh %165 : vector<8x64xf32>
    %167 = vector.extract_strided_slice %11 {offsets = [8, 0], sizes = [8, 32], strides = [1, 1]} : vector<56x32xf32> to vector<8x32xf32>
    %168 = vector.extract_strided_slice %166 {offsets = [0, 0], sizes = [8, 32], strides = [1, 1]} : vector<8x64xf32> to vector<8x32xf32>
    %cst_41 = arith.constant 1.000000e+00 : f32
    %169 = vector.broadcast %cst_41 : f32 to vector<8x32xf32>
    %170 = arith.addf %168, %169 : vector<8x32xf32>
    %171 = arith.mulf %170, %163 : vector<8x32xf32>
    %172 = arith.addf %167, %171 : vector<8x32xf32>
    %173 = math.tanh %172 : vector<8x32xf32>
    %174 = vector.extract_strided_slice %166 {offsets = [0, 32], sizes = [8, 32], strides = [1, 1]} : vector<8x64xf32> to vector<8x32xf32>
    %cst_42 = arith.constant 5.000000e-01 : f32
    %175 = vector.broadcast %cst_42 : f32 to vector<8x32xf32>
    %176 = arith.mulf %174, %175 : vector<8x32xf32>
    %cst_43 = arith.constant 5.000000e-01 : f32
    %177 = vector.broadcast %cst_43 : f32 to vector<8x32xf32>
    %178 = arith.addf %176, %177 : vector<8x32xf32>
    %cst_44 = arith.constant 1.000000e+00 : f32
    %179 = vector.broadcast %cst_44 : f32 to vector<8x32xf32>
    %180 = arith.subf %179, %178 : vector<8x32xf32>
    %181 = arith.mulf %180, %173 : vector<8x32xf32>
    %182 = arith.mulf %178, %158 : vector<8x32xf32>
    %183 = arith.addf %181, %182 : vector<8x32xf32>
    %184 = vector.extract_strided_slice %14 {offsets = [8, 0], sizes = [8, 32], strides = [1, 1]} : vector<56x32xi1> to vector<8x32xi1>
    %185 = arith.select %184, %183, %158 : vector<8x32xi1>, vector<8x32xf32>
    %186 = arith.truncf %185 : vector<8x32xf32> to vector<8x32xbf16>
    %cst_45 = arith.constant dense<0.000000e+00> : vector<8x64xf32>
    %187 = tpu.matmul %186, %16, %cst_45 {dimension_numbers = #tpu.dot_dimension_numbers<[1], [0], [0], [1], [0, 0, 1, 1], [], []>} : vector<8x32xbf16>, vector<32x64xbf16>, vector<8x64xf32> -> vector<8x64xf32>
    %cst_46 = arith.constant dense<0.000000e+00> : vector<8x32xf32>
    %188 = tpu.matmul %186, %17, %cst_46 {dimension_numbers = #tpu.dot_dimension_numbers<[1], [0], [0], [1], [0, 0, 1, 1], [], []>} : vector<8x32xbf16>, vector<32x32xbf16>, vector<8x32xf32> -> vector<8x32xf32>
    %189 = vector.broadcast %19 : vector<1x32xf32> to vector<8x32xf32>
    %190 = arith.addf %188, %189 : vector<8x32xf32>
    %191 = vector.extract_strided_slice %10 {offsets = [0, 0], sizes = [8, 64], strides = [1, 1]} : vector<56x64xf32> to vector<8x64xf32>
    %192 = arith.addf %191, %187 : vector<8x64xf32>
    %193 = math.tanh %192 : vector<8x64xf32>
    %194 = vector.extract_strided_slice %11 {offsets = [0, 0], sizes = [8, 32], strides = [1, 1]} : vector<56x32xf32> to vector<8x32xf32>
    %195 = vector.extract_strided_slice %193 {offsets = [0, 0], sizes = [8, 32], strides = [1, 1]} : vector<8x64xf32> to vector<8x32xf32>
    %cst_47 = arith.constant 1.000000e+00 : f32
    %196 = vector.broadcast %cst_47 : f32 to vector<8x32xf32>
    %197 = arith.addf %195, %196 : vector<8x32xf32>
    %198 = arith.mulf %197, %190 : vector<8x32xf32>
    %199 = arith.addf %194, %198 : vector<8x32xf32>
    %200 = math.tanh %199 : vector<8x32xf32>
    %201 = vector.extract_strided_slice %193 {offsets = [0, 32], sizes = [8, 32], strides = [1, 1]} : vector<8x64xf32> to vector<8x32xf32>
    %cst_48 = arith.constant 5.000000e-01 : f32
    %202 = vector.broadcast %cst_48 : f32 to vector<8x32xf32>
    %203 = arith.mulf %201, %202 : vector<8x32xf32>
    %cst_49 = arith.constant 5.000000e-01 : f32
    %204 = vector.broadcast %cst_49 : f32 to vector<8x32xf32>
    %205 = arith.addf %203, %204 : vector<8x32xf32>
    %cst_50 = arith.constant 1.000000e+00 : f32
    %206 = vector.broadcast %cst_50 : f32 to vector<8x32xf32>
    %207 = arith.subf %206, %205 : vector<8x32xf32>
    %208 = arith.mulf %207, %200 : vector<8x32xf32>
    %209 = arith.mulf %205, %185 : vector<8x32xf32>
    %210 = arith.addf %208, %209 : vector<8x32xf32>
    %211 = vector.extract_strided_slice %14 {offsets = [0, 0], sizes = [8, 32], strides = [1, 1]} : vector<56x32xi1> to vector<8x32xi1>
    %212 = arith.select %211, %210, %185 : vector<8x32xi1>, vector<8x32xf32>
    %213 = arith.truncf %212 : vector<8x32xf32> to vector<8x32xbf16>
    %cst_51 = arith.constant dense<0.000000e+00> : vector<8x8xf32>
    %214 = tpu.matmul %213, %21, %cst_51 {dimension_numbers = #tpu.dot_dimension_numbers<[1], [0], [0], [1], [0, 0, 1, 1], [], []>} : vector<8x32xbf16>, vector<32x8xbf16>, vector<8x8xf32> -> vector<8x8xf32>
    %215 = vector.broadcast %22 : vector<1x8xf32> to vector<8x8xf32>
    %216 = arith.addf %214, %215 : vector<8x8xf32>
    %c0_52 = arith.constant 0 : index
    %c0_53 = arith.constant 0 : index
    %217 = vector.load %arg3[%c0_52, %c0_53] : memref<8x8xf32, #tpu.memory_space<vmem>>, vector<8x8xf32>
    tpu.vector_store %arg3[%c0_52, %c0_53], %216 {strides = array<i32>} : memref<8x8xf32, #tpu.memory_space<vmem>>, vector<8x8xf32>,
    return
  }
}

</mosaic_0001>

<bundles_post_ra>
// kernel: tpu_custom_call.1
= control target key start
LH: loop header
LB: loop body
LE: loop exit
PB: predicated region body
PF: predicated region fallthrough
CT: control target
= control target key end

     0   :  { %v1419_v2 = vmov 0   ;;  %v1420_v10 = vmov 0.0   ;;  %vm1421_vm0 = vmmov 0   ;;  %s1422_s11 = smov 64   ;;  %s1725_s0 = inlined_call_operand.vmem [shape: s32[112,1], index: 0, kind: input, shape index: {}]   ;;  %s1726_s1 = inlined_call_operand.vmem [shape: bf16[192,96], index: 1, kind: input, shape index: {}]   ;;  %s1727_s2 = inlined_call_operand.vmem [shape: f32[2,32], index: 2, kind: input, shape index: {}]   ;;  %s1728_s3 = inlined_call_operand.hbm [shape: f32[8,8], index: 3, kind: output, shape index: {}]  }
   0x1   :  { %v18_v0 = vld [vmem:[%s1725_s0 + $0x10] sm:$0xff]  ;;  %v16_v1 = vld [vmem:[%s1725_s0] sm:$0xff]  ;;  %1354 = vset.pattern.permute.xlu1 %v1419_v2  ;;  %1353 = vset.pattern.permute.xlu0 %v1419_v2  ;;  %v19_v3 = vld [vmem:[%s1725_s0 + $0x18] sm:$0xff] }
   0x2   :  { %39 = vperm.xlu1 %1354, %v18_v0   ;;  %33 = vperm.xlu0 %1353, %v16_v1   ;;  %v17_v4 = vld [vmem:[%s1725_s0 + $0x8] sm:$0xff]  ;;  %v1463_v5 = vld [vmem:[%s1726_s1 + $0x40] sm:$0xff]   ;;  %v1359_v11 = vld [vmem:[%s1726_s1 + $0x10] sm:$0xff]  }
   0x3   :  { %v21_v6 = vld [vmem:[%s1725_s0 + $0x28] sm:$0xff]  ;;  %v1357_v7 = vld [vmem:[%s1726_s1] sm:$0xff]   ;;  %1226 = vmatprep.subr.bf16.mxu1 %v1420_v10  ;;  %v22_v13 = vld [vmem:[%s1725_s0 + $0x30] sm:$0xff]  ;;  %1230 = vmatprep.mubr.msk.bf16.mxu1 %vm1421_vm0, %v1420_v10 }
   0x4   :  { %v1358_v8 = vld [vmem:[%s1726_s1 + $0x8] sm:$0xff]   ;;  %v20_v9 = vld [vmem:[%s1725_s0 + $0x20] sm:$0xff]  ;;  %1202 = vmatprep.subr.bf16.mxu0 %v1357_v7  ;;  %1227 = vmatpush3.bf16.msra.mxu1 %v1463_v5  ;;  %v1360_v14 = vld [vmem:[%s1726_s1 + $0x18] sm:$0xff]  }
   0x5   :  { %1203 = vmatpush3.bf16.msra.mxu0 %v1357_v7  ;;  %1228 = vmatprep.subr.bf16.mxu1 %v1420_v10  ;;  %v1486_v12 = vld [vmem:[%s1726_s1 + $0x48] sm:$0xff]  }
   0x6   :  { %42 = vperm.xlu1 %1354, %v19_v3   ;;  %36 = vperm.xlu0 %1353, %v17_v4  }
   0x7   :  { %1204 = vmatprep.subr.bf16.mxu0 %v1358_v8 }
   0x8   :  { %1229 = vmatpush3.bf16.msra.mxu1 %v1486_v12 }
   0x9   :  { %1205 = vmatpush3.bf16.msra.mxu0 %v1358_v8 }
   0xa   :  { %48 = vperm.xlu1 %1354, %v21_v6   ;;  %45 = vperm.xlu0 %1353, %v20_v9  }
   0xb   :  { %1206 = vmatprep.subr.bf16.mxu0 %v1359_v11 }
   0xe   :  { %51 = vperm.xlu0 %1353, %v22_v13   ;;  %311 = vrot.lane.b32.xlu1 %v1463_v5, %s1422_s11 }
   0xf   :  { %8 = vsyncpa [#allocation3], 0  ;;  %1231 = vmatmul.mubr.bf16.vlgmr.msra.gmra.mrb[0].mxu1 %v1419_v2  ;;  %1234 = vmatprep.subr.bf16.mxu1 %v1420_v10  ;;  %v1361_v15 = vld [vmem:[%s1726_s1 + $0x20] sm:$0xff]   ;;  %v29_v16 = vld [vmem:[%s1725_s0 + $0x68] sm:$0xff]  ;;  %v30_v20 = vlaneseq  ;;  %v1423_v26 = vmov 1.0|1.0  }
  0x10   :  { %1207 = vmatpush3.bf16.msra.mxu0 %v1359_v11  ;;  %1238 = vmatprep.mubr.msk.bf16.mxu1 %vm1421_vm0, %v1420_v10  ;;  %v1362_v17 = vld [vmem:[%s1726_s1 + $0x28] sm:$0xff]   ;;  %v1363_v18 = vld [vmem:[%s1726_s1 + $0x30] sm:$0xff]   ;;  %v1364_v19 = vld [vmem:[%s1726_s1 + $0x38] sm:$0xff]   ;;  %s1424_s24 = smov 96   ;;  %vm263_vm13 = vcmask 261120  }
  0x11   :  { %1208 = vmatprep.subr.bf16.mxu0 %v1360_v14  ;;  %v31_v23 = vand.u32 127, %v30_v20  ;;  %v1552_v43 = vshrl.u32 %v30_v20, 7  ;;  %v1560_v49 = vld [vmem:[%s1727_s2] sm:$0x3] }
  0x12   :  { %313 = vrot.lane.b32.xlu0 %v1486_v12, %s1422_s11  ;;  %v28_v8 = vld [vmem:[%s1725_s0 + $0x60] sm:$0xff] }
  0x13   :  { %v309_v47 = vsub.s32 0, %v1552_v43  ;;  %v213_v63 = vadd.s32 48, %v1552_v43 }
  0x14   :  { %1209 = vmatpush3.bf16.msra.mxu0 %v1360_v14 }
  0x15   :  { %1210 = vmatprep.subr.bf16.mxu0 %v1361_v15  ;;  %v1563_v52 = vrot.slane %v1560_v49, %v309_v47 }
  0x16   :  { %233 = vperm.xlu0 %1353, %v29_v16  }
  0x18   :  { %1211 = vmatpush3.bf16.msra.mxu0 %v1361_v15 }
  0x19   :  { %1212 = vmatprep.subr.bf16.mxu0 %v1362_v17 }
  0x1c   :  { %1213 = vmatpush3.bf16.msra.mxu0 %v1362_v17 }
  0x1d   :  { %1214 = vmatprep.subr.bf16.mxu0 %v1363_v18 }
  0x20   :  { %1215 = vmatpush3.bf16.msra.mxu0 %v1363_v18 }
  0x21   :  { %1216 = vmatprep.subr.bf16.mxu0 %v1364_v19 }
  0x24   :  { %1217 = vmatpush3.bf16.msra.mxu0 %v1364_v19 }
  0x25   :  { %1266 = vmatprep.subr.bf16.mxu0 %v1420_v10 }
  0x81   :  { %v40_v21 = vpop.permute.xlu1 %39  ;;  %v34_v22 = vpop.permute.xlu0 %33 }
  0x82   :  { %vm55_vm1 = vcmp.eq.s32.totalorder %v31_v23, %v40_v21  ;;  %vm53_vm4 = vcmp.eq.s32.totalorder %v31_v23, %v34_v22 }
  0x85   :  { %v43_v24 = vpop.permute.xlu1 %42  ;;  %v37_v25 = vpop.permute.xlu0 %36 }
  0x86   :  { %vm56_vm2 = vcmp.eq.s32.totalorder %v31_v23, %v43_v24  ;;  %vm54_vm3 = vcmp.eq.s32.totalorder %v31_v23, %v37_v25 }
  0x87   :  { %vm1122_vm5 = vmpackc.low %vm56_vm2, %vm55_vm1 }
  0x88   :  { %vm1120_vm6 = vmpackc.low %vm54_vm3, %vm53_vm4  ;;  %vm1089_vm4 = vcmask 64512  }
  0x89   :  { %1218 = vmatprep.mubr.msk.bf16.mxu0 %vm1120_vm6, %v1423_v26  ;;  %v49_v27 = vpop.permute.xlu1 %48  ;;  %v46_v28 = vpop.permute.xlu0 %45 }
  0x8a   :  { %vm58_vm7 = vcmp.eq.s32.totalorder %v31_v23, %v49_v27  ;;  %1219 = vmatmul.mubr.msk.bf16.vlgmr.msra.gmra.mrb[0].mxu0 %vm1122_vm5, %v1423_v26  ;;  %vm57_vm8 = vcmp.eq.s32.totalorder %v31_v23, %v46_v28 }
  0x8b   :  { %vm1124_vm9 = vmpackc.low %vm58_vm7, %vm57_vm8 }
  0x8c   :  { %1222 = vmatprep.mubr.msk.bf16.mxu0 %vm1124_vm9, %v1423_v26 }
  0x8d   :  { %v52_v29 = vpop.permute.xlu0 %51  ;;  %v1521_v30 = vpop.permute.xlu1 %311 }
  0x8e   :  { %vm59_vm10 = vcmp.eq.s32.totalorder %v31_v23, %v52_v29  ;;  %1235 = vmatpush3.bf16.msra.mxu1 %v1521_v30  ;;  %1267 = vmatpush3.bf16.msra.mxu0 %v1521_v30 }
  0x8f   :  { %vm1126_vm11 = vmpackc.low %vm59_vm10, %vm59_vm10  ;;  %1236 = vmatprep.subr.bf16.mxu1 %v1420_v10  ;;  %1268 = vmatprep.subr.bf16.mxu0 %v1420_v10 }
  0x91   :  { %v1527_v31 = vpop.permute.xlu0 %313 }
  0x92   :  { %1223 = vmatmul.mubr.msk.bf16.gmra.mrb[4].mxu0 %vm1126_vm11, %v1423_v26  ;;  %1237 = vmatpush3.bf16.msra.mxu1 %v1527_v31 }
  0x93   :  { %1269 = vmatpush3.bf16.msra.mxu0 %v1527_v31  ;;  %1242 = vmatprep.subr.bf16.mxu1 %v1420_v10 }
  0x94   :  { %1270 = vmatprep.mubr.msk.bf16.mxu0 %vm1421_vm0, %v1420_v10  ;;  %1282 = vmatprep.subr.bf16.mxu0 %v1420_v10 }
  0x95   :  { %1239 = vmatmul.mubr.bf16.vlgmr.msra.gmra.mrb[4].mxu1 %v1419_v2  ;;  %v234_v1 = vpop.permute.xlu0 %233 }
  0x96   :  { %1243 = vmatpush3.bf16.msra.mxu1 %v1463_v5  ;;  %1246 = vmatprep.mubr.msk.bf16.mxu1 %vm1421_vm0, %v1420_v10  ;;  %vm241_vm12 = vcmp.lt.s32.totalorder %v213_v63, %v234_v1 }
  0x97   :  { %1244 = vmatprep.subr.bf16.mxu1 %v1420_v10 }
  0x9a   :  { %1245 = vmatpush3.bf16.msra.mxu1 %v1486_v12 }
  0x9b   :  { %1250 = vmatprep.subr.bf16.mxu1 %v1420_v10 }
  0xe2   :  { %v301_v32 = vpop.f32.mrb[0].mxu1 }
  0xe3   :  { %v1232_v33 = vpop.f32.mrb[1].mxu1 }
  0xe4   :  { %v304_v34 = vpop.f32.mrb[2].mxu1  ;;  %v212_v33 = vadd.s32 40, %v1552_v43 }
  0xe5   :  { %v1233_v35 = vpop.f32.mrb[3].mxu1 }
 0x15d   :  { %v1542_v36 = vpop.f32.mrb[0].mxu0 }
 0x15e   :  { %v1544_v37 = vpop.f32.mrb[1].mxu0 }
 0x15f   :  { %v1546_v38 = vpop.f32.mrb[2].mxu0 }
 0x160   :  { %v1548_v39 = vpop.f32.mrb[3].mxu0 }
 0x165   :  { %v1224_v40 = vpop.f32.mrb[4].mxu0 }
 0x166   :  { %v357_v41 = vadd.f32 %v1224_v40, %v301_v32  ;;  %v1550_v42 = vpop.f32.mrb[5].mxu0 }
 0x167   :  { %v1225_v44 = vpop.f32.mrb[6].mxu0 }
 0x168   :  { %1367 = vtanh.f32 %v357_v41  ;;  %v1554_v45 = vpop.f32.mrb[7].mxu0  ;;  %v351_v46 = vpop.f32.mrb[4].mxu1 }
 0x169   :  { %v1240_v48 = vpop.f32.mrb[5].mxu1  ;;  %v352_v53 = vadd.f32 %v351_v46, %v1563_v52 }
 0x16a   :  { %v354_v50 = vpop.f32.mrb[6].mxu1 }
 0x16b   :  { %v1241_v51 = vpop.f32.mrb[7].mxu1 }
 0x172   :  { %v1368_v54 = vpop.eup %1367 }
 0x173   :  { %v359_v55 = vadd.f32 1.0, %v1368_v54  ;;  %v367_v60 = vmul.f32 0.5, %v1368_v54 }
 0x175   :  { %v360_v56 = vmul.f32 %v359_v55, %v352_v53  ;;  %v368_v61 = vadd.f32 0.5, %v367_v60 }
 0x177   :  { %362 = vrot.lane.b32.xlu1 %v360_v56, %s1422_s11  ;;  %v369_v62 = vsub.f32 1.0, %v368_v61  ;;  %v375_v2 = vmul.f32 0.0, %v368_v61 }
 0x1e9   :  { %v363_v57 = vpop.permute.xlu1 %362 }
 0x1ea   :  { %v365_v58 = vadd.f32 %v1224_v40, %v363_v57 }
 0x1ec   :  { %1369 = vtanh.f32 %v365_v58 }
 0x1f6   :  { %v1370_v59 = vpop.eup %1369 }
 0x1f7   :  { %371 = vrot.lane.b32.xlu1 %v1370_v59, %s1424_s24 }
 0x269   :  { %v372_v0 = vpop.permute.xlu1 %371 }
 0x26a   :  { %v374_v3 = vmul.f32 %v372_v0, %v369_v62 }
 0x26c   :  { %v376_v4 = vadd.f32 %v375_v2, %v374_v3 }
 0x26e   :  { %v377_v6 = vsel %vm241_vm12, %v376_v4, 0.0 }
 0x26f   :  { %v378_v7 = vpack.c.bf16 %v377_v6, %v377_v6 }
 0x271   :  { %380 = vrot.lane.b32.xlu0 %v378_v7, %s1424_s24  ;;  %v211_v7 = vadd.s32 32, %v1552_v43 }
 0x275   :  { %230 = vperm.xlu0 %1353, %v28_v8  }
 0x2e3   :  { %v381_v9 = vpop.permute.xlu0 %380 }
 0x2e4   :  { %1247 = vmatmul.mubr.msk.bf16.vlgmr.msra.gmra.mrb[8].mxu1 %vm263_vm13, %v381_v9 }
 0x2e5   :  { %1251 = vmatpush3.bf16.msra.mxu1 %v1521_v30  ;;  %1254 = vmatprep.mubr.msk.bf16.mxu1 %vm1421_vm0, %v1420_v10 }
 0x2e6   :  { %1252 = vmatprep.subr.bf16.mxu1 %v1420_v10 }
 0x2e9   :  { %1253 = vmatpush3.bf16.msra.mxu1 %v1527_v31 }
 0x2ea   :  { %1258 = vmatprep.subr.bf16.mxu1 %v1420_v10 }
 0x2ec   :  { %1255 = vmatmul.mubr.msk.bf16.vlgmr.msra.gmra.mrb[12].mxu1 %vm263_vm13, %v381_v9 }
 0x2ed   :  { %1259 = vmatpush3.bf16.msra.mxu1 %v1463_v5  ;;  %1262 = vmatprep.mubr.msk.bf16.mxu1 %vm1421_vm0, %v1420_v10 }
 0x2ee   :  { %1260 = vmatprep.subr.bf16.mxu1 %v1420_v10 }
 0x2f1   :  { %1261 = vmatpush3.bf16.msra.mxu1 %v1486_v12 }
 0x2f2   :  { %1274 = vmatprep.subr.bf16.mxu1 %v1420_v10 }
 0x2f4   :  { %v231_v35 = vpop.permute.xlu0 %230 }
 0x2f5   :  { %vm240_vm14 = vcmp.lt.s32.totalorder %v212_v33, %v231_v35 }
 0x3b7   :  { %v419_v11 = vpop.f32.mrb[8].mxu1 }
 0x3b8   :  { %v465_v13 = vadd.f32 %v419_v11, %v1554_v45  ;;  %v1248_v14 = vpop.f32.mrb[9].mxu1 }
 0x3b9   :  { %v422_v15 = vpop.f32.mrb[10].mxu1 }
 0x3ba   :  { %1371 = vtanh.f32 %v465_v13  ;;  %v1249_v16 = vpop.f32.mrb[11].mxu1 }
 0x3bf   :  { %v459_v17 = vpop.f32.mrb[12].mxu1 }
 0x3c0   :  { %v1256_v18 = vpop.f32.mrb[13].mxu1  ;;  %v460_v22 = vadd.f32 %v459_v17, %v1563_v52 }
 0x3c1   :  { %v462_v19 = vpop.f32.mrb[14].mxu1 }
 0x3c2   :  { %v1257_v20 = vpop.f32.mrb[15].mxu1 }
 0x3c4   :  { %v1372_v21 = vpop.eup %1371 }
 0x3c5   :  { %v467_v23 = vadd.f32 1.0, %v1372_v21  ;;  %v475_v28 = vmul.f32 0.5, %v1372_v21 }
 0x3c7   :  { %v468_v24 = vmul.f32 %v467_v23, %v460_v22  ;;  %v476_v29 = vadd.f32 0.5, %v475_v28 }
 0x3c9   :  { %470 = vrot.lane.b32.xlu1 %v468_v24, %s1422_s11  ;;  %v477_v32 = vsub.f32 1.0, %v476_v29  ;;  %v483_v40 = vmul.f32 %v476_v29, %v377_v6 }
 0x43b   :  { %v471_v25 = vpop.permute.xlu1 %470 }
 0x43c   :  { %v473_v26 = vadd.f32 %v471_v25, %v1554_v45  ;;  %v27_v45 = vld [vmem:[%s1725_s0 + $0x58] sm:$0xff] }
 0x43e   :  { %1373 = vtanh.f32 %v473_v26 }
 0x448   :  { %v1374_v27 = vpop.eup %1373 }
 0x449   :  { %479 = vrot.lane.b32.xlu1 %v1374_v27, %s1424_s24 }
 0x4bb   :  { %v480_v34 = vpop.permute.xlu1 %479 }
 0x4bc   :  { %v482_v41 = vmul.f32 %v480_v34, %v477_v32 }
 0x4be   :  { %v484_v44 = vadd.f32 %v483_v40, %v482_v41 }
 0x4c0   :  { %v485_v46 = vsel %vm240_vm14, %v484_v44, %v377_v6 }
 0x4c1   :  { %v486_v47 = vpack.c.bf16 %v485_v46, %v485_v46 }
 0x4c3   :  { %488 = vrot.lane.b32.xlu0 %v486_v47, %s1424_s24 }
 0x4c7   :  { %227 = vperm.xlu0 %1353, %v27_v45  }
 0x535   :  { %v489_v48 = vpop.permute.xlu0 %488 }
 0x536   :  { %1263 = vmatmul.mubr.msk.bf16.vlgmr.msra.gmra.mrb[16].mxu1 %vm263_vm13, %v489_v48  ;;  %1271 = vmatmul.mubr.msk.bf16.vlgmr.msra.gmra.mrb[8].mxu0 %vm263_vm13, %v489_v48 }
 0x537   :  { %1283 = vmatpush3.bf16.msra.mxu0 %v1521_v30  ;;  %1275 = vmatpush3.bf16.msra.mxu1 %v1463_v5 }
 0x538   :  { %1284 = vmatprep.subr.bf16.mxu0 %v1420_v10  ;;  %1276 = vmatprep.subr.bf16.mxu1 %v1420_v10 }
 0x539   :  { %1278 = vmatprep.mubr.msk.bf16.mxu1 %vm1421_vm0, %v1420_v10  ;;  %1286 = vmatprep.mubr.msk.bf16.mxu0 %vm1421_vm0, %v1420_v10 }
 0x53b   :  { %1285 = vmatpush3.bf16.msra.mxu0 %v1527_v31  ;;  %1277 = vmatpush3.bf16.msra.mxu1 %v1486_v12 }
 0x53c   :  { %1298 = vmatprep.subr.bf16.mxu0 %v1420_v10  ;;  %1290 = vmatprep.subr.bf16.mxu1 %v1420_v10 }
 0x546   :  { %v228_v9 = vpop.permute.xlu0 %227 }
 0x547   :  { %vm239_vm15 = vcmp.lt.s32.totalorder %v211_v7, %v228_v9 }
 0x609   :  { %v527_v50 = vpop.f32.mrb[16].mxu1  ;;  %v567_v51 = vpop.f32.mrb[8].mxu0 }
 0x60a   :  { %v573_v53 = vadd.f32 %v527_v50, %v1550_v42  ;;  %v1264_v54 = vpop.f32.mrb[17].mxu1  ;;  %v1272_v55 = vpop.f32.mrb[9].mxu0  ;;  %v568_v61 = vadd.f32 %v567_v51, %v1563_v52 }
 0x60b   :  { %v530_v56 = vpop.f32.mrb[18].mxu1  ;;  %v570_v57 = vpop.f32.mrb[10].mxu0 }
 0x60c   :  { %1375 = vtanh.f32 %v573_v53  ;;  %v1265_v58 = vpop.f32.mrb[19].mxu1  ;;  %v1273_v59 = vpop.f32.mrb[11].mxu0 }
 0x616   :  { %v1376_v60 = vpop.eup %1375 }
 0x617   :  { %v575_v62 = vadd.f32 1.0, %v1376_v60  ;;  %v583_v3 = vmul.f32 0.5, %v1376_v60 }
 0x619   :  { %v576_v63 = vmul.f32 %v575_v62, %v568_v61  ;;  %v584_v4 = vadd.f32 0.5, %v583_v3 }
 0x61b   :  { %578 = vrot.lane.b32.xlu1 %v576_v63, %s1422_s11  ;;  %v585_v6 = vsub.f32 1.0, %v584_v4  ;;  %v591_v11 = vmul.f32 %v584_v4, %v485_v46 }
 0x68d   :  { %v579_v0 = vpop.permute.xlu1 %578 }
 0x68e   :  { %v581_v1 = vadd.f32 %v579_v0, %v1550_v42  ;;  %v26_v42 = vld [vmem:[%s1725_s0 + $0x50] sm:$0xff] }
 0x690   :  { %1377 = vtanh.f32 %v581_v1 }
 0x69a   :  { %v1378_v2 = vpop.eup %1377 }
 0x69b   :  { %587 = vrot.lane.b32.xlu1 %v1378_v2, %s1424_s24 }
 0x70d   :  { %v588_v8 = vpop.permute.xlu1 %587 }
 0x70e   :  { %v590_v13 = vmul.f32 %v588_v8, %v585_v6 }
 0x710   :  { %v592_v14 = vadd.f32 %v591_v11, %v590_v13 }
 0x712   :  { %v593_v15 = vsel %vm239_vm15, %v592_v14, %v485_v46  ;;  %v210_v46 = vadd.s32 24, %v1552_v43  ;;  %v209_v14 = vadd.s32 16, %v1552_v43 }
 0x713   :  { %v594_v16 = vpack.c.bf16 %v593_v15, %v593_v15 }
 0x715   :  { %596 = vrot.lane.b32.xlu0 %v594_v16, %s1424_s24 }
 0x719   :  { %224 = vperm.xlu0 %1353, %v26_v42  }
 0x787   :  { %v597_v17 = vpop.permute.xlu0 %596 }
 0x788   :  { %1279 = vmatmul.mubr.msk.bf16.vlgmr.msra.gmra.mrb[20].mxu1 %vm263_vm13, %v597_v17  ;;  %1287 = vmatmul.mubr.msk.bf16.vlgmr.msra.gmra.mrb[12].mxu0 %vm263_vm13, %v597_v17 }
 0x789   :  { %1299 = vmatpush3.bf16.msra.mxu0 %v1521_v30  ;;  %1291 = vmatpush3.bf16.msra.mxu1 %v1463_v5 }
 0x78a   :  { %1300 = vmatprep.subr.bf16.mxu0 %v1420_v10  ;;  %1292 = vmatprep.subr.bf16.mxu1 %v1420_v10 }
 0x78b   :  { %1294 = vmatprep.mubr.msk.bf16.mxu1 %vm1421_vm0, %v1420_v10  ;;  %1302 = vmatprep.mubr.msk.bf16.mxu0 %vm1421_vm0, %v1420_v10 }
 0x78d   :  { %1301 = vmatpush3.bf16.msra.mxu0 %v1527_v31  ;;  %1293 = vmatpush3.bf16.msra.mxu1 %v1486_v12 }
 0x78e   :  { %1314 = vmatprep.subr.bf16.mxu0 %v1420_v10  ;;  %1306 = vmatprep.subr.bf16.mxu1 %v1420_v10 }
 0x798   :  { %v225_v45 = vpop.permute.xlu0 %224 }
 0x799   :  { %vm238_vm1 = vcmp.lt.s32.totalorder %v210_v46, %v225_v45  ;;  %v208_v46 = vadd.s32 8, %v1552_v43 }
 0x85b   :  { %v635_v18 = vpop.f32.mrb[20].mxu1  ;;  %v675_v19 = vpop.f32.mrb[12].mxu0 }
 0x85c   :  { %v681_v20 = vadd.f32 %v1546_v38, %v635_v18  ;;  %v1280_v21 = vpop.f32.mrb[21].mxu1  ;;  %v1288_v22 = vpop.f32.mrb[13].mxu0  ;;  %v676_v28 = vadd.f32 %v675_v19, %v1563_v52 }
 0x85d   :  { %v638_v23 = vpop.f32.mrb[22].mxu1  ;;  %v678_v24 = vpop.f32.mrb[14].mxu0 }
 0x85e   :  { %1379 = vtanh.f32 %v681_v20  ;;  %v1281_v25 = vpop.f32.mrb[23].mxu1  ;;  %v1289_v26 = vpop.f32.mrb[15].mxu0 }
 0x868   :  { %v1380_v27 = vpop.eup %1379 }
 0x869   :  { %v683_v29 = vadd.f32 1.0, %v1380_v27  ;;  %v691_v40 = vmul.f32 0.5, %v1380_v27 }
 0x86b   :  { %v684_v32 = vmul.f32 %v683_v29, %v676_v28  ;;  %v692_v41 = vadd.f32 0.5, %v691_v40 }
 0x86d   :  { %686 = vrot.lane.b32.xlu1 %v684_v32, %s1422_s11  ;;  %v693_v44 = vsub.f32 1.0, %v692_v41  ;;  %v699_v48 = vmul.f32 %v692_v41, %v593_v15 }
 0x8df   :  { %v687_v33 = vpop.permute.xlu1 %686 }
 0x8e0   :  { %v689_v34 = vadd.f32 %v1546_v38, %v687_v33  ;;  %v25_v38 = vld [vmem:[%s1725_s0 + $0x48] sm:$0xff] }
 0x8e2   :  { %1381 = vtanh.f32 %v689_v34 }
 0x8ec   :  { %v1382_v35 = vpop.eup %1381 }
 0x8ed   :  { %695 = vrot.lane.b32.xlu1 %v1382_v35, %s1424_s24 }
 0x95f   :  { %v696_v47 = vpop.permute.xlu1 %695 }
 0x960   :  { %v698_v50 = vmul.f32 %v696_v47, %v693_v44 }
 0x962   :  { %v700_v51 = vadd.f32 %v699_v48, %v698_v50 }
 0x964   :  { %v701_v53 = vsel %vm238_vm1, %v700_v51, %v593_v15 }
 0x965   :  { %v702_v54 = vpack.c.bf16 %v701_v53, %v701_v53 }
 0x967   :  { %704 = vrot.lane.b32.xlu0 %v702_v54, %s1424_s24 }
 0x96b   :  { %221 = vperm.xlu0 %1353, %v25_v38  }
 0x9d9   :  { %v705_v55 = vpop.permute.xlu0 %704 }
 0x9da   :  { %1295 = vmatmul.mubr.msk.bf16.vlgmr.msra.gmra.mrb[24].mxu1 %vm263_vm13, %v705_v55  ;;  %1303 = vmatmul.mubr.msk.bf16.vlgmr.msra.gmra.mrb[16].mxu0 %vm263_vm13, %v705_v55 }
 0x9db   :  { %1315 = vmatpush3.bf16.msra.mxu0 %v1521_v30  ;;  %1307 = vmatpush3.bf16.msra.mxu1 %v1463_v5 }
 0x9dc   :  { %1316 = vmatprep.subr.bf16.mxu0 %v1420_v10  ;;  %1308 = vmatprep.subr.bf16.mxu1 %v1420_v10 }
 0x9dd   :  { %1310 = vmatprep.mubr.msk.bf16.mxu1 %vm1421_vm0, %v1420_v10  ;;  %1318 = vmatprep.mubr.msk.bf16.mxu0 %vm1421_vm0, %v1420_v10 }
 0x9df   :  { %1317 = vmatpush3.bf16.msra.mxu0 %v1527_v31  ;;  %1309 = vmatpush3.bf16.msra.mxu1 %v1486_v12 }
 0x9e0   :  { %1330 = vmatprep.subr.bf16.mxu0 %v1420_v10  ;;  %1322 = vmatprep.subr.bf16.mxu1 %v1420_v10 }
 0x9ea   :  { %v222_v16 = vpop.permute.xlu0 %221 }
 0x9eb   :  { %vm237_vm2 = vcmp.lt.s32.totalorder %v209_v14, %v222_v16 }
 0xaad   :  { %v743_v56 = vpop.f32.mrb[24].mxu1  ;;  %v783_v57 = vpop.f32.mrb[16].mxu0 }
 0xaae   :  { %v789_v58 = vadd.f32 %v1542_v36, %v743_v56  ;;  %v1296_v59 = vpop.f32.mrb[25].mxu1  ;;  %v1304_v60 = vpop.f32.mrb[17].mxu0  ;;  %v784_v2 = vadd.f32 %v783_v57, %v1563_v52 }
 0xaaf   :  { %v746_v61 = vpop.f32.mrb[26].mxu1  ;;  %v786_v62 = vpop.f32.mrb[18].mxu0 }
 0xab0   :  { %1383 = vtanh.f32 %v789_v58  ;;  %v1297_v63 = vpop.f32.mrb[27].mxu1  ;;  %v1305_v0 = vpop.f32.mrb[19].mxu0 }
 0xaba   :  { %v1384_v1 = vpop.eup %1383 }
 0xabb   :  { %v791_v3 = vadd.f32 1.0, %v1384_v1  ;;  %v799_v9 = vmul.f32 0.5, %v1384_v1 }
 0xabd   :  { %v792_v4 = vmul.f32 %v791_v3, %v784_v2  ;;  %v800_v11 = vadd.f32 0.5, %v799_v9 }
 0xabf   :  { %794 = vrot.lane.b32.xlu1 %v792_v4, %s1422_s11  ;;  %v801_v13 = vsub.f32 1.0, %v800_v11  ;;  %v807_v42 = vmul.f32 %v800_v11, %v701_v53 }
 0xb31   :  { %v795_v6 = vpop.permute.xlu1 %794 }
 0xb32   :  { %v797_v7 = vadd.f32 %v1542_v36, %v795_v6  ;;  %v24_v36 = vld [vmem:[%s1725_s0 + $0x40] sm:$0xff] }
 0xb34   :  { %1385 = vtanh.f32 %v797_v7  ;;  %v1365_v7 = vld [vmem:[%s1726_s1 + $0x50] sm:$0xff]  }
 0xb3e   :  { %v1386_v8 = vpop.eup %1385 }
 0xb3f   :  { %803 = vrot.lane.b32.xlu1 %v1386_v8, %s1424_s24  ;;  %v1366_v8 = vld [vmem:[%s1726_s1 + $0x58] sm:$0xff]   ;;  %s1425_s1 = smov [#allocation2]  }
 0xbb1   :  { %v804_v15 = vpop.permute.xlu1 %803 }
 0xbb2   :  { %v806_v17 = vmul.f32 %v804_v15, %v801_v13 }
 0xbb4   :  { %v808_v18 = vadd.f32 %v807_v42, %v806_v17 }
 0xbb6   :  { %v809_v19 = vsel %vm237_vm2, %v808_v18, %v701_v53 }
 0xbb7   :  { %v810_v20 = vpack.c.bf16 %v809_v19, %v809_v19 }
 0xbb9   :  { %812 = vrot.lane.b32.xlu0 %v810_v20, %s1424_s24 }
 0xbbd   :  { %218 = vperm.xlu0 %1353, %v24_v36  }
 0xc2b   :  { %v813_v21 = vpop.permute.xlu0 %812 }
 0xc2c   :  { %1311 = vmatmul.mubr.msk.bf16.vlgmr.msra.gmra.mrb[28].mxu1 %vm263_vm13, %v813_v21  ;;  %1319 = vmatmul.mubr.msk.bf16.vlgmr.msra.gmra.mrb[20].mxu0 %vm263_vm13, %v813_v21 }
 0xc2d   :  { %1331 = vmatpush3.bf16.msra.mxu0 %v1521_v30  ;;  %1323 = vmatpush3.bf16.msra.mxu1 %v1463_v5 }
 0xc2e   :  { %1332 = vmatprep.subr.bf16.mxu0 %v1420_v10  ;;  %1324 = vmatprep.subr.bf16.mxu1 %v1420_v10 }
 0xc2f   :  { %1326 = vmatprep.mubr.msk.bf16.mxu1 %vm1421_vm0, %v1420_v10  ;;  %1334 = vmatprep.mubr.msk.bf16.mxu0 %vm1421_vm0, %v1420_v10 }
 0xc31   :  { %1333 = vmatpush3.bf16.msra.mxu0 %v1527_v31  ;;  %1325 = vmatpush3.bf16.msra.mxu1 %v1486_v12 }
 0xc32   :  { %1338 = vmatprep.subr.bf16.mxu1 %v1420_v10 }
 0xc3c   :  { %v219_v45 = vpop.permute.xlu0 %218 }
 0xc3d   :  { %vm236_vm3 = vcmp.lt.s32.totalorder %v208_v46, %v219_v45 }
 0xcff   :  { %v851_v22 = vpop.f32.mrb[28].mxu1  ;;  %v891_v30 = vpop.f32.mrb[20].mxu0 }
 0xd00   :  { %v897_v5 = vadd.f32 %v851_v22, %v1548_v39  ;;  %v1312_v23 = vpop.f32.mrb[29].mxu1  ;;  %v1320_v24 = vpop.f32.mrb[21].mxu0  ;;  %v892_v32 = vadd.f32 %v891_v30, %v1563_v52 }
 0xd01   :  { %v854_v25 = vpop.f32.mrb[30].mxu1  ;;  %v894_v26 = vpop.f32.mrb[22].mxu0 }
 0xd02   :  { %1387 = vtanh.f32 %v897_v5  ;;  %v1313_v27 = vpop.f32.mrb[31].mxu1  ;;  %v1321_v28 = vpop.f32.mrb[23].mxu0 }
 0xd0c   :  { %v1388_v29 = vpop.eup %1387 }
 0xd0d   :  { %v899_v33 = vadd.f32 1.0, %v1388_v29  ;;  %v907_v40 = vmul.f32 0.5, %v1388_v29 }
 0xd0f   :  { %v900_v31 = vmul.f32 %v899_v33, %v892_v32  ;;  %v908_v41 = vadd.f32 0.5, %v907_v40 }
 0xd11   :  { %902 = vrot.lane.b32.xlu1 %v900_v31, %s1422_s11  ;;  %v909_v44 = vsub.f32 1.0, %v908_v41  ;;  %v915_v48 = vmul.f32 %v908_v41, %v809_v19 }
 0xd83   :  { %v903_v12 = vpop.permute.xlu1 %902 }
 0xd84   :  { %v905_v34 = vadd.f32 %v903_v12, %v1548_v39  ;;  %v23_v39 = vld [vmem:[%s1725_s0 + $0x38] sm:$0xff] }
 0xd86   :  { %1389 = vtanh.f32 %v905_v34 }
 0xd90   :  { %v1390_v35 = vpop.eup %1389 }
 0xd91   :  { %911 = vrot.lane.b32.xlu1 %v1390_v35, %s1424_s24 }
 0xe03   :  { %v912_v47 = vpop.permute.xlu1 %911 }
 0xe04   :  { %v914_v50 = vmul.f32 %v912_v47, %v909_v44 }
 0xe06   :  { %v916_v51 = vadd.f32 %v915_v48, %v914_v50 }
 0xe08   :  { %v917_v53 = vsel %vm236_vm3, %v916_v51, %v809_v19 }
 0xe09   :  { %v918_v54 = vpack.c.bf16 %v917_v53, %v917_v53 }
 0xe0b   :  { %920 = vrot.lane.b32.xlu0 %v918_v54, %s1424_s24 }
 0xe0f   :  { %215 = vperm.xlu0 %1353, %v23_v39  }
 0xe7d   :  { %v921_v38 = vpop.permute.xlu0 %920 }
 0xe7e   :  { %1327 = vmatmul.mubr.msk.bf16.vlgmr.msra.gmra.mrb[32].mxu1 %vm263_vm13, %v921_v38  ;;  %1335 = vmatmul.mubr.msk.bf16.vlgmr.msra.gmra.mrb[24].mxu0 %vm263_vm13, %v921_v38 }
 0xe7f   :  { %1342 = vmatprep.mubr.msk.bf16.mxu1 %vm1421_vm0, %v1420_v10  ;;  %1339 = vmatpush3.bf16.msra.mxu1 %v1365_v7 }
 0xe80   :  { %1340 = vmatprep.subr.bf16.mxu1 %v1420_v10  ;;  %v1029_v10 = vsub.s32 1, %v1552_v43 }
 0xe82   :  { %v1030_v20 = vrot.slane %v1560_v49, %v1029_v10 }
 0xe83   :  { %1341 = vmatpush3.bf16.msra.mxu1 %v1366_v8 }
 0xe8e   :  { %v216_v14 = vpop.permute.xlu0 %215 }
 0xe8f   :  { %vm235_vm0 = vcmp.lt.s32.totalorder %v1552_v43, %v216_v14 }
 0xf51   :  { %v959_v55 = vpop.f32.mrb[32].mxu1  ;;  %v999_v56 = vpop.f32.mrb[24].mxu0 }
 0xf52   :  { %v1005_v57 = vadd.f32 %v959_v55, %v1544_v37  ;;  %v1328_v58 = vpop.f32.mrb[33].mxu1  ;;  %v1336_v59 = vpop.f32.mrb[25].mxu0  ;;  %v1000_v1 = vadd.f32 %v999_v56, %v1563_v52 }
 0xf53   :  { %v962_v60 = vpop.f32.mrb[34].mxu1  ;;  %v1002_v61 = vpop.f32.mrb[26].mxu0 }
 0xf54   :  { %1391 = vtanh.f32 %v1005_v57  ;;  %v1329_v62 = vpop.f32.mrb[35].mxu1  ;;  %v1337_v63 = vpop.f32.mrb[27].mxu0 }
 0xf5e   :  { %v1392_v0 = vpop.eup %1391 }
 0xf5f   :  { %v1007_v2 = vadd.f32 1.0, %v1392_v0  ;;  %v1015_v9 = vmul.f32 0.5, %v1392_v0 }
 0xf61   :  { %v1008_v3 = vmul.f32 %v1007_v2, %v1000_v1  ;;  %v1016_v11 = vadd.f32 0.5, %v1015_v9 }
 0xf63   :  { %1010 = vrot.lane.b32.xlu1 %v1008_v3, %s1422_s11  ;;  %v1017_v13 = vsub.f32 1.0, %v1016_v11  ;;  %v1023_v15 = vmul.f32 %v1016_v11, %v917_v53  ;;  %s1097_s11 = sshll.u32 %s1425_s1, 4  ;;  %s1098_s11 = int_to_ptr.vmem [resolvable:$true] %s1097_s11 }
 0xf64   :  { %s1395_s13 = scalar_lea.vmem %s1098_s11, 128  ;;  %p1400_p1 = scmp.lt.s32.totalorder %s1098_s11, %s1098_s11 }
 0xf65   :  { %p1396_p0 = scmp.ne.s32.totalorder %s1098_s11, %s1395_s13  ;;  %p1401_p2 = scmp.lt.s32.totalorder %s1395_s13, %s1395_s13 }
 0xf67   :  { %p1402_p3 = por %p1401_p2, %p1400_p1 }
 0xf69   :  { %p1403_p4 = pnand %p1402_p3, %p1396_p0 }
 0xfd5   :  { %v1011_v4 = vpop.permute.xlu1 %1010 }
 0xfd6   :  { %v1013_v6 = vadd.f32 %v1011_v4, %v1544_v37 }
 0xfd8   :  { %1393 = vtanh.f32 %v1013_v6 }
 0xfe2   :  { %v1394_v52 = vpop.eup %1393 }
 0xfe3   :  { %1019 = vrot.lane.b32.xlu1 %v1394_v52, %s1424_s24 }
0x1055   :  { %v1020_v37 = vpop.permute.xlu1 %1019 }
0x1056   :  { %v1022_v16 = vmul.f32 %v1020_v37, %v1017_v13 }
0x1058   :  { %v1024_v42 = vadd.f32 %v1023_v15, %v1022_v16 }
0x105a   :  { %v1025_v17 = vsel %vm235_vm0, %v1024_v42, %v917_v53 }
0x105b   :  { %v1026_v18 = vpack.c.bf16 %v1025_v17, %v1025_v17 }
0x105d   :  { %1032 = vrot.lane.b32.xlu0 %v1026_v18, %s1424_s24 }
0x10cf   :  { %v1033_v19 = vpop.permute.xlu0 %1032 }
0x10d0   :  { %1343 = vmatmul.mubr.msk.bf16.vlgmr.msra.gmra.mrb[36].mxu1 %vm263_vm13, %v1033_v19 }
0x11a3   :  { %v1083_v36 = vpop.f32.mrb[36].mxu1 }
0x11a4   :  { %v1084_v21 = vadd.f32 %v1083_v36, %v1030_v20  ;;  %v1344_v22 = vpop.f32.mrb[37].mxu1 }
0x11a5   :  { %v1086_v30 = vpop.f32.mrb[38].mxu1 }
0x11a6   :  { %v1345_v5 = vpop.f32.mrb[39].mxu1  ;;  %1090 = vst.msk [vmem:[#allocation2] sm:$0xff] %vm1089_vm4, %v1084_v21 }
0x11a7   :  { %1406 = shalt.err (!%p1403_p4)
}
0x11a8   :  { %s1407_s16 = scalar_lea.hbm %s1728_s3, 128 }
0x11a9   :  { %p1408_p5 = scmp.ne.s32.totalorder %s1728_s3, %s1407_s16  ;;  %p1411_p6 = scmp.lt.u32.totalorder %s1407_s16, %s1728_s3 }
0x11ab   :  { %p1413_p7 = pnand %p1411_p6, %p1408_p5 }
0x11ad   :  { %1416 = shalt.err (!%p1413_p7)
}
0x11ae   :  { %1100 = dma.vmem_to_hbm [thread:$0]  %s1098_s11, 128, %s1728_s3, [#allocation3]  }
0x11af   :  { %1417 = dma.done.wait [#allocation3], 128  }
0x11b0   :  { %1418 = vsyncadd [#allocation3], 4294967168 }
0x11b1   :  { %1104 = vsyncpa [#allocation3], 1 }

</bundles_post_ra>
